<compile_context>
chip_gen: v5e
topology: v5e:2x2
jax: 0.10.0
libtpu: 0.0.40
codegen_flags: <defaults>
</compile_context>

<pallas_src>
import jax
import jax.numpy as jnp
from jax.experimental import pallas as pl
from jax.experimental.pallas import tpu as pltpu

EPS = 1e-5


def _detect_vmem_bytes():
    """Physical VMEM of the attached TPU; conservative 64 MiB fallback (covers v7x)."""
    try:
        info = pltpu.get_tpu_info()
        for attr in ("vmem_capacity_bytes", "vmem_bytes", "vmem_size_bytes"):
            v = getattr(info, attr, None)
            if v is None:
                continue
            v = int(v)
            if v > 0:
                return v
    except Exception:
        pass
    return 64 * 1024 * 1024


_VMEM_CAP = _detect_vmem_bytes()
# ~96 MiB scoped limit on v5e/v6e (128 MiB physical), <=48 MiB on v7x (64 MiB physical).
_VMEM_LIMIT = max(32 * 1024 * 1024, min(int(0.75 * _VMEM_CAP), 100 * 1024 * 1024))
# Budget for the double-buffered per-step slabs (inputs + pooled outputs + weights + stats).
_DATA_BUDGET = min(int(0.45 * _VMEM_CAP), 48 * 1024 * 1024)
_MAX_LANES = 8192  # past this the ~0.35us/step overhead is already fully amortized


def _round_up(x, m):
    return ((x + m - 1) // m) * m


def _choose_spatial_tile(s4, cin, cout):
    """Lane tile (multiple of 128) over the pooled spatial dim, sized from the VMEM budget."""
    lane_bytes = 2 * cin * 2 + 2 * cout * 4            # 2x bf16 x slab + 2x f32 pooled slab /lane
    fixed = 2 * cout * cin * 2 + 16 * cout + (1 << 20)  # weights (double-buffered), stats, slack
    avail = max(_DATA_BUDGET - fixed, 128 * lane_bytes)
    t_max = max(128, min(_MAX_LANES, (avail // lane_bytes) // 128 * 128))
    s4_128 = _round_up(s4, 128)
    if s4_128 <= t_max:            # whole pooled image fits one lane-dense (padded) tile
        return s4_128
    t = t_max                      # prefer an exact multiple-of-128 divisor (no padding needed)
    while t >= 512:
        if s4 % t == 0:
            return t
        t -= 128
    return t_max                   # otherwise pad S4 up to a multiple of the budget-sized tile


def _conv_relu_pool_stats_kernel(x_ref, w_ref, pool_ref, sum_ref, sumsq_ref):
    # x_ref    : (Cin,  tS) bf16  one 2x2-window phase slab of one spatial tile of one image
    # w_ref    : (Cout, Cin) bf16 1x1-conv weights
    # pool_ref : (Cout, tS) f32   accumulates the sum over the 4 phases (= 4 * avg-pooled ReLU)
    # sum_ref  : (Cout, 1)  f32   per-channel sum over this tile (written once, at the last phase)
    # sumsq_ref: (Cout, 1)  f32   per-channel sum of squares over this tile (all 4 phases)
    p = pl.program_id(2)
    last = pl.num_programs(2) - 1

    # 1x1 conv == channel matmul on the MXU, bf16 inputs, f32 accumulation.
    y = jnp.dot(w_ref[...], x_ref[...], preferred_element_type=jnp.float32)
    y = jnp.maximum(y, 0.0)                     # ReLU before BN, per the module
    ss = jnp.sum(y * y, axis=1, keepdims=True)  # (Cout, 1)

    @pl.when(p == 0)
    def _init():
        pool_ref[...] = y
        sumsq_ref[...] = ss

    @pl.when(p != 0)
    def _accumulate():
        pool_ref[...] += y
        sumsq_ref[...] += ss

    # sum(relu(conv)) over the tile == sum of the accumulated pooled sums, so compute it once at
    # the last phase (drops 3 of 4 cross-lane reductions and one store stream per grid step).
    @pl.when(p == last)
    def _finalize_sum():
        sum_ref[...] = jnp.sum(pool_ref[...], axis=1, keepdims=True)
    # The 1/4 of the 2x2 average and the BN affine are folded into the second kernel.


def _bn_affine_kernel(p_ref, scale_ref, bias_ref, out_ref):
    # p_ref: (Cout, tS) pooled *sums*; scale/bias: (Cout, 1) with the 0.25 folded into scale.
    out_ref[...] = p_ref[...] * scale_ref[...] + bias_ref[...]


@jax.jit
def transition_layer(x_nchw, conv_w, gamma, beta):
    """x_nchw: [N, Cin, H, W] f32; conv_w: [Cout, Cin, 1, 1]; gamma/beta: [Cout]."""
    N, Cin, H, W = x_nchw.shape
    Cout = conv_w.shape[0]
    assert H % 2 == 0 and W % 2 == 0, "AvgPool2d(2,2) expects even H and W"
    H2, W2 = H // 2, W // 2
    S4 = H2 * W2

    tS = _choose_spatial_tile(S4, Cin, Cout)
    S4p = _round_up(S4, tS)
    T = S4p // tS
    # v7x megacore balance: keep at least 2 parallel grid units when the shape allows it.
    if N * T < 2 and tS % 256 == 0:
        tS //= 2
        S4p = _round_up(S4, tS)
        T = S4p // tS

    # bf16 BEFORE the de-interleave so the strided transpose moves 2-byte elements; the zero pad
    # (relu(W@0)=0 -> contributes 0 to pooled sums and BN stats) fuses into the same pass.
    #   x_ph[p, n, c, oh*W2 + ow] = x[n, c, 2*oh + p//2, 2*ow + p%2]
    x_bf = x_nchw.astype(jnp.bfloat16)
    x_ph = x_bf.reshape(N, Cin, H2, 2, W2, 2)
    x_ph = jnp.transpose(x_ph, (3, 5, 0, 1, 2, 4)).reshape(4, N, Cin, S4)
    if S4p != S4:
        x_ph = jnp.pad(x_ph, ((0, 0), (0, 0), (0, 0), (0, S4p - S4)))
    w2 = conv_w.reshape(Cout, Cin).astype(jnp.bfloat16)
    # TODO(synk): padding Cin/Cout to 256 would fill the v6e/v7x MXU for small channel counts.

    flops = 2 * N * Cin * Cout * 4 * S4p + 6 * N * Cout * 4 * S4p
    bytes_accessed = (4 * N * Cin * S4p * 2 + Cout * Cin * 2
                      + N * Cout * S4p * 4 + 2 * N * T * Cout * 4)

    pooled_sum, sum_parts, sumsq_parts = pl.pallas_call(
        _conv_relu_pool_stats_kernel,
        out_shape=(
            jax.ShapeDtypeStruct((N, Cout, S4p), jnp.float32),    # pooled ReLU sums (NCHW order)
            jax.ShapeDtypeStruct((N, T, Cout, 1), jnp.float32),   # per-tile channel sums
            jax.ShapeDtypeStruct((N, T, Cout, 1), jnp.float32),   # per-tile channel sum-of-squares
        ),
        grid=(N, T, 4),
        in_specs=[
            pl.BlockSpec((None, None, Cin, tS), lambda n, t, p: (p, n, 0, t)),
            pl.BlockSpec((Cout, Cin), lambda n, t, p: (0, 0)),
        ],
        out_specs=(
            pl.BlockSpec((None, Cout, tS), lambda n, t, p: (n, 0, t)),
            pl.BlockSpec((None, None, Cout, 1), lambda n, t, p: (n, t, 0, 0)),
            pl.BlockSpec((None, None, Cout, 1), lambda n, t, p: (n, t, 0, 0)),
        ),
        compiler_params=pltpu.CompilerParams(
            dimension_semantics=("parallel", "parallel", "arbitrary"),
            vmem_limit_bytes=_VMEM_LIMIT),
        cost_estimate=pl.CostEstimate(
            flops=flops, transcendentals=0, bytes_accessed=bytes_accessed),
    )(x_ph, w2)

    # Tiny (Cout-sized) BN statistics reduction + affine folding, done in plain XLA.
    count = float(N * H * W)  # true pixel count; padded lanes contributed exactly 0
    ch_sum = jnp.sum(sum_parts[..., 0], axis=(0, 1))      # (Cout,)
    ch_sumsq = jnp.sum(sumsq_parts[..., 0], axis=(0, 1))  # (Cout,)
    mean = ch_sum / count
    # One-pass biased variance E[y^2] - E[y]^2 (matches BN training normalization); clamp the
    # tiny negatives f32 cancellation can produce.
    var = jnp.maximum(ch_sumsq / count - mean * mean, 0.0)
    scale = gamma.astype(jnp.float32) * jax.lax.rsqrt(var + EPS)
    bias = beta.astype(jnp.float32) - mean * scale
    scale_p = (0.25 * scale).reshape(Cout, 1)  # fold the 2x2-average 1/4 into the BN scale
    bias_p = bias.reshape(Cout, 1)

    out = pl.pallas_call(
        _bn_affine_kernel,
        out_shape=jax.ShapeDtypeStruct((N, Cout, S4p), jnp.float32),
        grid=(N, T),
        in_specs=[
            pl.BlockSpec((None, Cout, tS), lambda n, t: (n, 0, t)),
            pl.BlockSpec((Cout, 1), lambda n, t: (0, 0)),
            pl.BlockSpec((Cout, 1), lambda n, t: (0, 0)),
        ],
        out_specs=pl.BlockSpec((None, Cout, tS), lambda n, t: (n, 0, t)),
        input_output_aliases={0: 0},  # apply the affine in place on the pooled buffer
        compiler_params=pltpu.CompilerParams(
            dimension_semantics=("parallel", "parallel"),
            vmem_limit_bytes=_VMEM_LIMIT),
    )(pooled_sum, scale_p, bias_p)

    out = out[:, :, :S4]  # drop padded lanes (no-op when S4 is tiled exactly)
    # (N, Cout, H2*W2) is already NCHW order -> free reshape, no output transpose.
    return out.reshape(N, Cout, H2, W2)


def transition_layer_ref(x, conv_w, gamma, beta):
    """Pure-JAX reference of the PyTorch forward (training-mode BatchNorm)."""
    y = jax.lax.conv_general_dilated(
        x, conv_w, window_strides=(1, 1), padding="VALID",
        dimension_numbers=("NCHW", "OIHW", "NCHW"))
    y = jnp.maximum(y, 0.0)
    mean = jnp.mean(y, axis=(0, 2, 3), keepdims=True)
    var = jnp.var(y, axis=(0, 2, 3), keepdims=True)
    y = (y - mean) * jax.lax.rsqrt(var + EPS)
    y = y * gamma.reshape(1, -1, 1, 1) + beta.reshape(1, -1, 1, 1)
    N, C, H, W = y.shape
    return y.reshape(N, C, H // 2, 2, W // 2, 2).mean(axis=(3, 5))


if __name__ == "__main__":
    N, Cin, Cout, H, W = 2, 8, 4, 16, 16

    key = jax.random.PRNGKey(0)
    kx, kw, kg, kb = jax.random.split(key, 4)
    x = jax.random.normal(kx, (N, Cin, H, W), dtype=jnp.float32)
    conv_w = jax.random.normal(kw, (Cout, Cin, 1, 1), dtype=jnp.float32) * 0.1
    gamma = jax.random.normal(kg, (Cout,), dtype=jnp.float32) * 0.1 + 1.0
    beta = jax.random.normal(kb, (Cout,), dtype=jnp.float32) * 0.1

    out = jax.block_until_ready(transition_layer(x, conv_w, gamma, beta))
    assert out.shape == (N, Cout, H // 2, W // 2), out.shape

    # Tight check vs. a reference fed the same bf16-quantized matmul inputs
    # (isolates kernel logic from the intentional bf16 input quantization).
    xq = x.astype(jnp.bfloat16).astype(jnp.float32)
    wq = conv_w.astype(jnp.bfloat16).astype(jnp.float32)
    ref_q = jax.block_until_ready(transition_layer_ref(xq, wq, gamma, beta))
    assert jnp.allclose(out, ref_q, atol=1e-3, rtol=1e-3), float(jnp.max(jnp.abs(out - ref_q)))

    # Loose sanity check vs. the full-f32 PyTorch-equivalent reference
    # (difference is bounded by the bf16 rounding of x and the conv weights).
    ref = jax.block_until_ready(transition_layer_ref(x, conv_w, gamma, beta))
    assert jnp.allclose(out, ref, atol=1e-1, rtol=1e-1), float(jnp.max(jnp.abs(out - ref)))

    print("KERNEL_OK")
</pallas_src>

<mosaic_0001>
module attributes {stable_mosaic.version = 11 : i64} {
  func.func @_conv_relu_pool_stats_kernel(%arg0: i32, %arg1: i32, %arg2: i32, %arg3: memref<1x1x8x128xbf16, #tpu.memory_space<vmem>>, %arg4: memref<4x8xbf16, #tpu.memory_space<vmem>>, %arg5: memref<1x4x128xf32, #tpu.memory_space<vmem>>, %arg6: memref<1x1x4x1xf32, #tpu.memory_space<vmem>>, %arg7: memref<1x1x4x1xf32, #tpu.memory_space<vmem>>) attributes {dimension_semantics = [#tpu.dimension_semantics<parallel>, #tpu.dimension_semantics<parallel>, #tpu.dimension_semantics<arbitrary>], iteration_bounds = array<i64: 2, 1, 4>, scalar_prefetch = 0 : i64, scratch_operands = 0 : i64, tpu.core_type = #tpu.core_type<tc>, window_params = [{transform_indices = @transform_0, window_bounds = array<i64: 1, 1, 8, 128>}, {pipeline_mode = #tpu.pipeline_mode<synchronous>, transform_indices = @transform_1, window_bounds = array<i64: 4, 8>}, {transform_indices = @transform_2, window_bounds = array<i64: 1, 4, 128>}, {transform_indices = @transform_3, window_bounds = array<i64: 1, 1, 4, 1>}, {transform_indices = @transform_4, window_bounds = array<i64: 1, 1, 4, 1>}]} {
    %c0 = arith.constant 0 : index
    %c0_0 = arith.constant 0 : index
    %0 = vector.load %arg4[%c0, %c0_0] : memref<4x8xbf16, #tpu.memory_space<vmem>>, vector<4x8xbf16>
    %c0_1 = arith.constant 0 : index
    %c0_2 = arith.constant 0 : index
    %c0_3 = arith.constant 0 : index
    %c0_4 = arith.constant 0 : index
    %1 = vector.load %arg3[%c0_1, %c0_2, %c0_3, %c0_4] : memref<1x1x8x128xbf16, #tpu.memory_space<vmem>>, vector<1x1x8x128xbf16>
    %2 = vector.shape_cast %1 : vector<1x1x8x128xbf16> to vector<8x128xbf16>
    %cst = arith.constant dense<0.000000e+00> : vector<4x128xf32>
    %3 = tpu.matmul %0, %2, %cst {dimension_numbers = #tpu.dot_dimension_numbers<[1], [0], [0], [1], [0, 0, 1, 1], [], []>} : vector<4x8xbf16>, vector<8x128xbf16>, vector<4x128xf32> -> vector<4x128xf32>
    %cst_5 = arith.constant 0.000000e+00 : f32
    %4 = vector.broadcast %cst_5 : f32 to vector<4x128xf32>
    %5 = arith.maximumf %3, %4 : vector<4x128xf32>
    %6 = arith.mulf %5, %5 : vector<4x128xf32>
    %cst_6 = arith.constant dense<0.000000e+00> : vector<4xf32>
    %7 = vector.multi_reduction <add>, %6, %cst_6 [1] : vector<4x128xf32> to vector<4xf32>
    %8 = vector.shape_cast %7 : vector<4xf32> to vector<4x1xf32>
    %c0_i32 = arith.constant 0 : i32
    %9 = arith.cmpi eq, %arg2, %c0_i32 : i32
    %10 = arith.extui %9 : i1 to i32
    %c0_i32_7 = arith.constant 0 : i32
    %11 = arith.cmpi ne, %10, %c0_i32_7 : i32
    scf.if %11 {
      %c0_11 = arith.constant 0 : index
      %c0_12 = arith.constant 0 : index
      %c0_13 = arith.constant 0 : index
      %18 = vector.load %arg5[%c0_11, %c0_12, %c0_13] : memref<1x4x128xf32, #tpu.memory_space<vmem>>, vector<1x4x128xf32>
      %19 = vector.shape_cast %18 : vector<1x4x128xf32> to vector<4x128xf32>
      %20 = vector.shape_cast %5 : vector<4x128xf32> to vector<1x4x128xf32>
      tpu.vector_store %arg5[%c0_11, %c0_12, %c0_13], %20 {strides = array<i32>} : memref<1x4x128xf32, #tpu.memory_space<vmem>>, vector<1x4x128xf32>,
      %c0_14 = arith.constant 0 : index
      %c0_15 = arith.constant 0 : index
      %c0_16 = arith.constant 0 : index
      %c0_17 = arith.constant 0 : index
      %21 = vector.load %arg7[%c0_14, %c0_15, %c0_16, %c0_17] : memref<1x1x4x1xf32, #tpu.memory_space<vmem>>, vector<1x1x4x1xf32>
      %22 = vector.shape_cast %21 : vector<1x1x4x1xf32> to vector<4x1xf32>
      %23 = vector.shape_cast %8 : vector<4x1xf32> to vector<1x1x4x1xf32>
      tpu.vector_store %arg7[%c0_14, %c0_15, %c0_16, %c0_17], %23 {strides = array<i32>} : memref<1x1x4x1xf32, #tpu.memory_space<vmem>>, vector<1x1x4x1xf32>,
    } else {
    }
    %c0_i32_8 = arith.constant 0 : i32
    %12 = arith.cmpi ne, %arg2, %c0_i32_8 : i32
    %13 = arith.extui %12 : i1 to i32
    %c0_i32_9 = arith.constant 0 : i32
    %14 = arith.cmpi ne, %13, %c0_i32_9 : i32
    scf.if %14 {
      %c0_11 = arith.constant 0 : index
      %c0_12 = arith.constant 0 : index
      %c0_13 = arith.constant 0 : index
      %18 = vector.load %arg5[%c0_11, %c0_12, %c0_13] : memref<1x4x128xf32, #tpu.memory_space<vmem>>, vector<1x4x128xf32>
      %19 = vector.shape_cast %18 : vector<1x4x128xf32> to vector<4x128xf32>
      %20 = arith.addf %19, %5 : vector<4x128xf32>
      %c0_14 = arith.constant 0 : index
      %c0_15 = arith.constant 0 : index
      %c0_16 = arith.constant 0 : index
      %21 = vector.load %arg5[%c0_14, %c0_15, %c0_16] : memref<1x4x128xf32, #tpu.memory_space<vmem>>, vector<1x4x128xf32>
      %22 = vector.shape_cast %21 : vector<1x4x128xf32> to vector<4x128xf32>
      %23 = vector.shape_cast %20 : vector<4x128xf32> to vector<1x4x128xf32>
      tpu.vector_store %arg5[%c0_14, %c0_15, %c0_16], %23 {strides = array<i32>} : memref<1x4x128xf32, #tpu.memory_space<vmem>>, vector<1x4x128xf32>,
      %c0_17 = arith.constant 0 : index
      %c0_18 = arith.constant 0 : index
      %c0_19 = arith.constant 0 : index
      %c0_20 = arith.constant 0 : index
      %24 = vector.load %arg7[%c0_17, %c0_18, %c0_19, %c0_20] : memref<1x1x4x1xf32, #tpu.memory_space<vmem>>, vector<1x1x4x1xf32>
      %25 = vector.shape_cast %24 : vector<1x1x4x1xf32> to vector<4x1xf32>
      %26 = arith.addf %25, %8 : vector<4x1xf32>
      %c0_21 = arith.constant 0 : index
      %c0_22 = arith.constant 0 : index
      %c0_23 = arith.constant 0 : index
      %c0_24 = arith.constant 0 : index
      %27 = vector.load %arg7[%c0_21, %c0_22, %c0_23, %c0_24] : memref<1x1x4x1xf32, #tpu.memory_space<vmem>>, vector<1x1x4x1xf32>
      %28 = vector.shape_cast %27 : vector<1x1x4x1xf32> to vector<4x1xf32>
      %29 = vector.shape_cast %26 : vector<4x1xf32> to vector<1x1x4x1xf32>
      tpu.vector_store %arg7[%c0_21, %c0_22, %c0_23, %c0_24], %29 {strides = array<i32>} : memref<1x1x4x1xf32, #tpu.memory_space<vmem>>, vector<1x1x4x1xf32>,
    } else {
    }
    %c3_i32 = arith.constant 3 : i32
    %15 = arith.cmpi eq, %arg2, %c3_i32 : i32
    %16 = arith.extui %15 : i1 to i32
    %c0_i32_10 = arith.constant 0 : i32
    %17 = arith.cmpi ne, %16, %c0_i32_10 : i32
    scf.if %17 {
      %c0_11 = arith.constant 0 : index
      %c0_12 = arith.constant 0 : index
      %c0_13 = arith.constant 0 : index
      %18 = vector.load %arg5[%c0_11, %c0_12, %c0_13] : memref<1x4x128xf32, #tpu.memory_space<vmem>>, vector<1x4x128xf32>
      %19 = vector.shape_cast %18 : vector<1x4x128xf32> to vector<4x128xf32>
      %cst_14 = arith.constant dense<0.000000e+00> : vector<4xf32>
      %20 = vector.multi_reduction <add>, %19, %cst_14 [1] : vector<4x128xf32> to vector<4xf32>
      %21 = vector.shape_cast %20 : vector<4xf32> to vector<4x1xf32>
      %c0_15 = arith.constant 0 : index
      %c0_16 = arith.constant 0 : index
      %c0_17 = arith.constant 0 : index
      %c0_18 = arith.constant 0 : index
      %22 = vector.load %arg6[%c0_15, %c0_16, %c0_17, %c0_18] : memref<1x1x4x1xf32, #tpu.memory_space<vmem>>, vector<1x1x4x1xf32>
      %23 = vector.shape_cast %22 : vector<1x1x4x1xf32> to vector<4x1xf32>
      %24 = vector.shape_cast %21 : vector<4x1xf32> to vector<1x1x4x1xf32>
      tpu.vector_store %arg6[%c0_15, %c0_16, %c0_17, %c0_18], %24 {strides = array<i32>} : memref<1x1x4x1xf32, #tpu.memory_space<vmem>>, vector<1x1x4x1xf32>,
    } else {
    }
    return
  }
  func.func @transform_0(%arg0: i32, %arg1: i32, %arg2: i32) -> (i32, i32, i32, i32) {
    %c0_i32 = arith.constant 0 : i32
    %c0_i32_0 = arith.constant 0 : i32
    return %arg2, %arg0, %c0_i32, %arg1 : i32, i32, i32, i32
  }
  func.func @transform_1(%arg0: i32, %arg1: i32, %arg2: i32) -> (i32, i32) {
    %c0_i32 = arith.constant 0 : i32
    %c0_i32_0 = arith.constant 0 : i32
    %c0_i32_1 = arith.constant 0 : i32
    return %c0_i32, %c0_i32_0 : i32, i32
  }
  func.func @transform_2(%arg0: i32, %arg1: i32, %arg2: i32) -> (i32, i32, i32) {
    %c0_i32 = arith.constant 0 : i32
    %c0_i32_0 = arith.constant 0 : i32
    return %arg0, %c0_i32, %arg1 : i32, i32, i32
  }
  func.func @transform_3(%arg0: i32, %arg1: i32, %arg2: i32) -> (i32, i32, i32, i32) {
    %c0_i32 = arith.constant 0 : i32
    %c0_i32_0 = arith.constant 0 : i32
    %c0_i32_1 = arith.constant 0 : i32
    return %arg0, %arg1, %c0_i32, %c0_i32_0 : i32, i32, i32, i32
  }
  func.func @transform_4(%arg0: i32, %arg1: i32, %arg2: i32) -> (i32, i32, i32, i32) {
    %c0_i32 = arith.constant 0 : i32
    %c0_i32_0 = arith.constant 0 : i32
    %c0_i32_1 = arith.constant 0 : i32
    return %arg0, %arg1, %c0_i32, %c0_i32_0 : i32, i32, i32, i32
  }
}

module attributes {stable_mosaic.version = 11 : i64} {
  func.func @_bn_affine_kernel(%arg0: i32, %arg1: i32, %arg2: memref<1x4x128xf32, #tpu.memory_space<vmem>>, %arg3: memref<4x1xf32, #tpu.memory_space<vmem>>, %arg4: memref<4x1xf32, #tpu.memory_space<vmem>>, %arg5: memref<1x4x128xf32, #tpu.memory_space<vmem>>) attributes {dimension_semantics = [#tpu.dimension_semantics<parallel>, #tpu.dimension_semantics<parallel>], iteration_bounds = array<i64: 2, 1>, scalar_prefetch = 0 : i64, scratch_operands = 0 : i64, tpu.core_type = #tpu.core_type<tc>, window_params = [{transform_indices = @transform_0, window_bounds = array<i64: 1, 4, 128>}, {pipeline_mode = #tpu.pipeline_mode<synchronous>, transform_indices = @transform_1, window_bounds = array<i64: 4, 1>}, {pipeline_mode = #tpu.pipeline_mode<synchronous>, transform_indices = @transform_2, window_bounds = array<i64: 4, 1>}, {transform_indices = @transform_3, window_bounds = array<i64: 1, 4, 128>}]} {
    %c0 = arith.constant 0 : index
    %c0_0 = arith.constant 0 : index
    %c0_1 = arith.constant 0 : index
    %0 = vector.load %arg2[%c0, %c0_0, %c0_1] : memref<1x4x128xf32, #tpu.memory_space<vmem>>, vector<1x4x128xf32>
    %1 = vector.shape_cast %0 : vector<1x4x128xf32> to vector<4x128xf32>
    %c0_2 = arith.constant 0 : index
    %c0_3 = arith.constant 0 : index
    %2 = vector.load %arg3[%c0_2, %c0_3] : memref<4x1xf32, #tpu.memory_space<vmem>>, vector<4x1xf32>
    %3 = vector.broadcast %2 : vector<4x1xf32> to vector<4x128xf32>
    %4 = arith.mulf %1, %3 : vector<4x128xf32>
    %c0_4 = arith.constant 0 : index
    %c0_5 = arith.constant 0 : index
    %5 = vector.load %arg4[%c0_4, %c0_5] : memref<4x1xf32, #tpu.memory_space<vmem>>, vector<4x1xf32>
    %6 = vector.broadcast %5 : vector<4x1xf32> to vector<4x128xf32>
    %7 = arith.addf %4, %6 : vector<4x128xf32>
    %c0_6 = arith.constant 0 : index
    %c0_7 = arith.constant 0 : index
    %c0_8 = arith.constant 0 : index
    %8 = vector.load %arg5[%c0_6, %c0_7, %c0_8] : memref<1x4x128xf32, #tpu.memory_space<vmem>>, vector<1x4x128xf32>
    %9 = vector.shape_cast %8 : vector<1x4x128xf32> to vector<4x128xf32>
    %10 = vector.shape_cast %7 : vector<4x128xf32> to vector<1x4x128xf32>
    tpu.vector_store %arg5[%c0_6, %c0_7, %c0_8], %10 {strides = array<i32>} : memref<1x4x128xf32, #tpu.memory_space<vmem>>, vector<1x4x128xf32>,
    return
  }
  func.func @transform_0(%arg0: i32, %arg1: i32) -> (i32, i32, i32) {
    %c0_i32 = arith.constant 0 : i32
    %c0_i32_0 = arith.constant 0 : i32
    return %arg0, %c0_i32, %arg1 : i32, i32, i32
  }
  func.func @transform_1(%arg0: i32, %arg1: i32) -> (i32, i32) {
    %c0_i32 = arith.constant 0 : i32
    %c0_i32_0 = arith.constant 0 : i32
    %c0_i32_1 = arith.constant 0 : i32
    return %c0_i32, %c0_i32_0 : i32, i32
  }
  func.func @transform_2(%arg0: i32, %arg1: i32) -> (i32, i32) {
    %c0_i32 = arith.constant 0 : i32
    %c0_i32_0 = arith.constant 0 : i32
    %c0_i32_1 = arith.constant 0 : i32
    return %c0_i32, %c0_i32_0 : i32, i32
  }
  func.func @transform_3(%arg0: i32, %arg1: i32) -> (i32, i32, i32) {
    %c0_i32 = arith.constant 0 : i32
    %c0_i32_0 = arith.constant 0 : i32
    return %arg0, %c0_i32, %arg1 : i32, i32, i32
  }
}

</mosaic_0001>

<bundles_post_ra>
// kernel: transition_layer.3
= control target key start
LH: loop header
LB: loop body
LE: loop exit
PB: predicated region body
PF: predicated region fallthrough
CT: control target
= control target key end

     0   :  { %s367_s12 = smov 0   ;;  %s369_s13 = smov 0   ;;  %s399_s0 = inlined_call_operand.vmem [shape: f32[2,4,128], index: 0, kind: input, shape index: {}, may-alias: {0,3}]   ;;  %s400_s1 = inlined_call_operand.vmem [shape: f32[4,1], index: 1, kind: input, shape index: {}]   ;;  %s401_s2 = inlined_call_operand.vmem [shape: f32[4,1], index: 2, kind: input, shape index: {}]   ;;  %s402_s3 = inlined_call_operand.vmem [shape: f32[2,4,128], index: 3, kind: output, shape index: {}, may-alias: {0,3}]  }
   0x1   :  { %s371_s14 = smov 0  }
   0x2 LB: > { %s25_s15 = sadd.s32 1, %s340_s13  ;;  %p291_p0 = scmp.ge.s32.totalorder %s344_s14, 1  ;;  %s344_s14 = sphi %s371_s14, %s13_s14   ;;  %s340_s13 = sphi %s369_s13, %s404_s13   ;;  %s336_s12 = sphi %s367_s12, %s403_s12  }
   0x3   : > { %p27_p1 = scmp.ge.s32.totalorder %s25_s15, 2  ;;  %p155_p2 = scmp.lt.s32.totalorder %s344_s14, 3 }
   0x5   : > { %s406_s15 = smov (%p27_p1, %s25_s15), 0  ;;  %p156_p3 = pnand %p291_p0, %p155_p2 }
   0x6   : > { %p183_p4 = scmp.lt.s32.totalorder (!%p156_p3), %s336_s12, 1 }
   0x7   : > { %159 = sbr.rel (%p156_p3) target bundleno = 140 (0x8c), region = 32 }
   0xc   : > { %v198_v0 = vld [vmem:[%s400_s1] sm:$0xf]  ;;  %v346_v1 = vmov 0   ;;  %s408_s12 = smov (!%p183_p4, %s336_s12), 1 }
   0xd   : > { %321 = vset.pattern.permute.xlu0 %v346_v1  ;;  %v205_v2 = vld [vmem:[%s401_s2] sm:$0xf]  ;;  %s292_s20 = sshll.u32 %s408_s12, 2 }
   0xe   : > { %201 = vperm.xlu0 %321, %v198_v0   ;;  %s189_s23 = scalar_lea.vmem %s399_s0, %s292_s20  ;;  %s196_s26 = scalar_lea.vmem %s402_s3, %s292_s20 }
   0xf   : > { %v197_v4 = vld [vmem:[%s189_s23] sm:$0xf] }
  0x16   : > { %208 = vperm.xlu0 %321, %v205_v2  }
  0x80   : > { %v202_v3 = vpop.permute.xlu0 %201 }
  0x81   : > { %v204_v5 = vmul.f32 %v202_v3, %v197_v4 }
  0x88   : > { %v209_v6 = vpop.permute.xlu0 %208 }
  0x89   : > { %v211_v7 = vadd.f32 %v209_v6, %v204_v5 }
  0x8b   : > { %212 = vst [vmem:[%s196_s26] sm:$0xf] %v211_v7 }
  0x8c PF: > { %s13_s14 = sadd.s32 1, %s344_s14   ;;  %s403_s12 = smov %s340_s13 }
  0x8d   : > { %p10_p5 = scmp.ge.s32.totalorder %s13_s14, 4   ;;  %s404_s13 = smov %s406_s15 }
  0x8f   :  { %12 = sbr.rel (!%p10_p5) target bundleno = 2 (0x2), region = 62 }

// kernel: transition_layer.2
= control target key start
LH: loop header
LB: loop body
LE: loop exit
PB: predicated region body
PF: predicated region fallthrough
CT: control target
= control target key end

     0   :  { %s628_s15 = smov 0   ;;  %s630_s16 = smov 0   ;;  %s714_s0 = inlined_call_operand.vmem [shape: bf16[4,2,8,128], index: 0, kind: input, shape index: {}]   ;;  %s715_s1 = inlined_call_operand.vmem [shape: bf16[4,8], index: 1, kind: input, shape index: {}]   ;;  %s716_s2 = inlined_call_operand.vmem [shape: f32[2,4,128], index: 2, kind: output, shape index: {0}]   ;;  %s717_s3 = inlined_call_operand.vmem [shape: f32[2,1,4,1], index: 3, kind: output, shape index: {1}]   ;;  %s718_s4 = inlined_call_operand.vmem [shape: f32[2,1,4,1], index: 4, kind: output, shape index: {2}]  }
   0x1   :  { %s632_s17 = smov 0   ;;  %s634_s18 = smov 0  }
   0x2   :  { %s636_s19 = smov 0  }
   0x3 LB: > { %s27_s20 = sadd.s32 1, %s593_s17  ;;  %s34_s21 = sadd.s32 1, %s597_s18  ;;  %s601_s19 = sphi %s636_s19, %s15_s19   ;;  %s597_s18 = sphi %s634_s18, %s722_s18   ;;  %s593_s17 = sphi %s632_s17, %s721_s17   ;;  %s589_s16 = sphi %s630_s16, %s720_s16   ;;  %s585_s15 = sphi %s628_s15, %s719_s15  }
   0x4   : > { %p28_p0 = scmp.ge.s32.totalorder %s27_s20, 4  ;;  %p511_p1 = scmp.ge.s32.totalorder %s601_s19, 1 }
   0x5   : > { %p202_p2 = scmp.lt.s32.totalorder %s601_s19, 9 }
   0x6   : > { %s724_s20 = smov (%p28_p0, %s27_s20), 0  ;;  %s726_s21 = smov (!%p28_p0, %s34_s21), %s597_s18 }
   0x7   : > { %p203_p3 = pnand %p511_p1, %p202_p2  ;;  %p36_p4 = scmp.ge.s32.totalorder %s726_s21, 2 }
   0x8   : > { %p250_p5 = scmp.lt.s32.totalorder (!%p203_p3), %s585_s15, 3  ;;  %p252_p6 = scmp.lt.s32.totalorder (!%p203_p3), %s589_s16, 1 }
   0x9   : > { %s728_s21 = smov (%p36_p4, %s726_s21), 0  ;;  %206 = sbr.rel (%p203_p3) target bundleno = 412 (0x19c), region = 28 }
   0xa   : > { %p518_p7 = scmp.ne.s32.totalorder (!%p203_p3), %s585_s15, 0 }
   0xe   : > { %s251_s22 = scalar_select %p250_p5, %s585_s15, 3  ;;  %vm289_vm0 = vcmask 1043456   ;;  %v283_v2 = vld [vmem:[%s715_s1] sm:$0x3]  ;;  %vm285_vm1 = vcmask 64512  }
   0xf   : > { %s730_s16 = smov (!%p252_p6, %s589_s16), 1 }
  0x10   : > { %s512_s23 = sshll.u32 %s251_s22, 1  ;;  %s662_s25 = sshll.u32 %s730_s16, 2 }
  0x11   : > { %s258_s24 = sadd.s32 %s512_s23, %s730_s16  ;;  %s668_s29 = scalar_lea.vmem %s716_s2, %s662_s25 }
  0x12   : > { %s513_s26 = sshll.u32 %s258_s24, 2  ;;  %s274_s9 = scalar_lea.vmem %s717_s3, %s662_s25 }
  0x13   : > { %s260_s6 = scalar_lea.vmem %s714_s0, %s513_s26  ;;  %s281_s12 = scalar_lea.vmem %s718_s4, %s662_s25 }
  0x14   : > { %v284_v0 = vld [vmem:[%s260_s6] sm:$0xf] }
  0x15   : > { %v291_v1 = vsel %vm289_vm0, %v284_v0, 0 }
  0x16   : > { %300 = vmatpush.bf16.msra.mxu0 %v291_v1 }
  0x19   : > { %517 = vmatmul.msk.bf16.vlgmr.msra.gmra.mxu0 %vm285_vm1, %v283_v2 }
  0x96   : > { %v302_v3 = vpop.f32.mrf.mxu0 }
  0x97   : > { %v306_v4 = vmax.f32 %v302_v3, 0.0 }
  0x99   : > { %v307_v5 = vmul.f32 %v306_v4, %v306_v4 }
  0x9b   : > { %v308_v6 = vsel %vm289_vm0, %v307_v5, 0.0 }
  0x9c   : > { %309 = vadd.xlane.f32.xlu0 %v308_v6 }
  0x9e   : > { %v304_v7 = vpop.f32.mrf.mxu0 }
 0x10b   : > { %314 = sbr.rel (%p518_p7) target bundleno = 274 (0x112), region = 32 }
 0x10f   : > { %v310_v8 = vpop.xlane.xlu0 %309 }
 0x110   : > { %315 = vst [vmem:[%s668_s29] sm:$0xf] %v306_v4  ;;  %vm316_vm2 = vcmask 3072  }
 0x111   : > { %317 = vst.msk [vmem:[%s281_s12] sm:$0xf] %vm316_vm2, %v310_v8 }
 0x112 PF: > { %p519_p8 = scmp.eq.s32.totalorder %s585_s15, 0 }
 0x114   : > { %321 = sbr.rel (%p519_p8) target bundleno = 286 (0x11e), region = 36 }
 0x119   : > { %v322_v9 = vld [vmem:[%s668_s29] sm:$0xf]  ;;  %vm327_vm3 = vcmask 3072  }
 0x11a   : > { %v325_v10 = vld [vmem:[%s281_s12] sm:$0xf]  ;;  %v323_v11 = vadd.f32 %v322_v9, %v306_v4 }
 0x11b   : > { %v326_v12 = vadd.f32 %v325_v10, %v310_v8 }
 0x11c   : > { %324 = vst [vmem:[%s668_s29] sm:$0xf] %v323_v11 }
 0x11d   : > { %328 = vst.msk [vmem:[%s281_s12] sm:$0xf] %vm327_vm3, %v326_v12 }
 0x11e PF: > { %p520_p9 = scmp.ne.s32.totalorder %s585_s15, 3 }
 0x120   : > { %332 = sbr.rel (%p520_p9) target bundleno = 412 (0x19c), region = 40 }
 0x125   : > { %v333_v13 = vld [vmem:[%s668_s29] sm:$0xf]  ;;  %vm337_vm4 = vcmask 3072  }
 0x126   : > { %v334_v14 = vsel %vm289_vm0, %v333_v13, 0.0 }
 0x127   : > { %335 = vadd.xlane.f32.xlu0 %v334_v14 }
 0x19a   : > { %v336_v15 = vpop.xlane.xlu0 %335 }
 0x19b   : > { %338 = vst.msk [vmem:[%s274_s9] sm:$0xf] %vm337_vm4, %v336_v15 }
 0x19c PF: > { %s15_s19 = sadd.s32 1, %s601_s19   ;;  %s719_s15 = smov %s593_s17 }
 0x19d   : > { %p12_p10 = scmp.ge.s32.totalorder %s15_s19, 10   ;;  %s720_s16 = smov %s597_s18 }
 0x19e   : > { %s721_s17 = smov %s724_s20  ;;  %s722_s18 = smov %s728_s21 }
 0x19f   :  { %14 = sbr.rel (!%p12_p10) target bundleno = 3 (0x3), region = 94 }

</bundles_post_ra>
